<compile_context>
chip_gen: v6e
topology: v6e:2x2x1
jax: 0.10.0
libtpu: 0.0.40
codegen_flags: <defaults>
</compile_context>

<pallas_src>
import jax
import jax.numpy as jnp
import numpy as np
from jax.experimental import pallas as pl
from jax.experimental.pallas import tpu as pltpu

LANES = 1024          # lane width of the 2-D layout (multiple of 128)
MAX_TILE_ROWS = 1024  # max sublane rows per grid step (multiple of 8)

# Selection matrix: row t sums the softmax weights of all LUT indices whose bit
# t is set (bit0 -> a*b, bit1 -> a*(1-b), bit2 -> (1-a)*b, bit3 -> (1-a)*(1-b)).
_BIT_SEL = np.array(
    [[(i >> bit) & 1 for i in range(16)] for bit in range(4)], dtype=np.float32
)


def _cdiv(a, b):
    return -(-a // b)


def _round_up(a, b):
    return _cdiv(a, b) * b


def _layout(n):
    """Pick (rows_pad, tile_rows, num_tiles) for a batch of n samples."""
    rows = max(_cdiv(n, LANES), 1)
    num_tiles = _cdiv(rows, MAX_TILE_ROWS)
    if rows >= 16:
        # >= 2 steps (and an even count) so both v7x TensorCores get sharded work.
        num_tiles = max(num_tiles, 2)
        num_tiles += num_tiles % 2
    tile_rows = _round_up(_cdiv(rows, num_tiles), 8)   # waste < 8 rows per tile
    rows_pad = num_tiles * tile_rows
    return rows_pad, tile_rows, num_tiles


def gate_kernel(k_ref, ab_ref, o_ref):
    # k_ref:  (4,) f32 in SMEM -- [k0, k1, k2, k3]
    # ab_ref: (2, tile_rows, LANES) f32 in VMEM -- a-plane / b-plane
    # o_ref:  (tile_rows, LANES) f32 in VMEM
    a = ab_ref[0]
    b = ab_ref[1]
    k0 = k_ref[0]
    k1 = k_ref[1]
    k2 = k_ref[2]
    k3 = k_ref[3]
    # out = k0 + k1*a + k2*b + k3*a*b, grouped as two FMA chains.
    o_ref[...] = (k1 * a + k0) + (k3 * a + k2) * b


def _coefficients(lut_tpe):
    """Collapse softmax(lut_tpe) over the 16 LUT rows into 4 bilinear coeffs."""
    w = jax.nn.softmax(lut_tpe.astype(jnp.float32), axis=0).reshape(-1)   # (16,)
    c = jnp.asarray(_BIT_SEL) @ w                                         # (4,)
    c_ab, c_anb, c_nab, c_nn = c[0], c[1], c[2], c[3]
    return jnp.stack(
        [c_nn, c_anb - c_nn, c_nab - c_nn, c_ab - c_anb - c_nab + c_nn]
    ).astype(jnp.float32)                                                 # (4,)


def _gate_core(k, ab, rows_pad, tile_rows, num_tiles):
    """ab: (2, rows_pad, LANES) f32 planar buffer -> (rows_pad, LANES) f32."""
    return pl.pallas_call(
        gate_kernel,
        out_shape=jax.ShapeDtypeStruct((rows_pad, LANES), jnp.float32),
        grid_spec=pltpu.PrefetchScalarGridSpec(
            num_scalar_prefetch=0,
            grid=(num_tiles,),
            in_specs=[
                pl.BlockSpec(memory_space=pltpu.MemorySpace.SMEM),        # k (4,)
                pl.BlockSpec((2, tile_rows, LANES), lambda i: (0, i, 0)),  # a/b
            ],
            out_specs=pl.BlockSpec((tile_rows, LANES), lambda i: (i, 0)),
        ),
        compiler_params=pltpu.CompilerParams(
            dimension_semantics=("parallel",),
            vmem_limit_bytes=40 * 1024 * 1024,
        ),
    )(k, ab)


def _unpad(out2d, N, n_pad):
    flat = out2d.reshape(-1)
    if n_pad != N:                 # skip the copy entirely when layout-aligned
        flat = flat[:N]
    return flat.reshape(N, 1)


@jax.jit
def gate_forward(x, lut_tpe):
    """x: (N, 2) float32, lut_tpe: (16, 1) float32 -> (N, 1) float32."""
    N = x.shape[0]
    rows_pad, tile_rows, num_tiles = _layout(N)
    n_pad = rows_pad * LANES

    k = _coefficients(lut_tpe)

    # Single fused pad+reshape+transpose pass producing the planar a/b buffer.
    xf = x.astype(jnp.float32)
    if n_pad != N:
        xf = jnp.pad(xf, ((0, n_pad - N), (0, 0)))
    ab = xf.reshape(rows_pad, LANES, 2).transpose(2, 0, 1)    # (2, rows_pad, LANES)

    out2d = _gate_core(k, ab, rows_pad, tile_rows, num_tiles)
    # Padded tail samples (a=b=0) produce k0 and are sliced away here.
    return _unpad(out2d, N, n_pad)


@jax.jit
def gate_forward_planar(x2, lut_tpe):
    """Preferred zero-de-interleave interface: x2 is (2, N) = stacked [a; b]."""
    N = x2.shape[1]
    rows_pad, tile_rows, num_tiles = _layout(N)
    n_pad = rows_pad * LANES

    k = _coefficients(lut_tpe)

    xf = x2.astype(jnp.float32)
    if n_pad != N:
        xf = jnp.pad(xf, ((0, 0), (0, n_pad - N)))
    ab = xf.reshape(2, rows_pad, LANES)                       # bitcast-only

    out2d = _gate_core(k, ab, rows_pad, tile_rows, num_tiles)
    return _unpad(out2d, N, n_pad)


def gate_reference(x, lut_tpe):
    """Pure-JAX reference mirroring the PyTorch forward exactly."""
    a = x[:, 0]
    not_a = 1 - a
    b = x[:, 1]
    not_b = 1 - b
    not_a_not_b = not_a * not_b
    not_a_b = not_a * b
    a_not_b = a * not_b
    a_b = a * b
    lut0001 = a_b
    lut0010 = a_not_b
    lut0100 = not_a_b
    lut1000 = not_a_not_b
    lut0011 = lut0001 + lut0010
    lut0101 = lut0001 + lut0100
    lut0110 = lut0010 + lut0100
    lut1001 = lut0001 + lut1000
    lut1010 = lut0010 + lut1000
    lut1100 = lut0100 + lut1000
    lut0111 = lut0001 + lut0010 + lut0100
    lut1011 = lut0001 + lut0010 + lut1000
    lut1101 = lut0001 + lut0100 + lut1000
    lut1110 = lut0010 + lut0100 + lut1000
    lut0000 = jnp.zeros_like(lut0001)
    lut1111 = jnp.ones_like(lut0001)
    lut = jnp.stack(
        [lut0000, lut0001, lut0010, lut0011,
         lut0100, lut0101, lut0110, lut0111,
         lut1000, lut1001, lut1010, lut1011,
         lut1100, lut1101, lut1110, lut1111],
        axis=1,
    )
    lut_t = jax.nn.softmax(lut_tpe, axis=0)
    return jnp.matmul(lut, lut_t, precision=jax.lax.Precision.HIGHEST)


if __name__ == "__main__":
    key = jax.random.PRNGKey(0)
    k_param, k_x = jax.random.split(key)

    # Deterministic parameter init, same shape/distribution as torch.rand(16, 1).
    lut_tpe = jax.random.uniform(k_param, (16, 1), dtype=jnp.float32)

    # Small batch of gate inputs in [0, 1], shape (N, 2).
    N = 8
    x = jax.random.uniform(k_x, (N, 2), dtype=jnp.float32)

    out = jax.block_until_ready(gate_forward(x, lut_tpe))
    ref = jax.block_until_ready(gate_reference(x, lut_tpe))
    assert out.shape == (N, 1)
    np.testing.assert_allclose(np.asarray(out), np.asarray(ref), rtol=1e-5, atol=1e-5)

    # Planar (2, N) interface produces identical results.
    out_p = jax.block_until_ready(gate_forward_planar(x.T, lut_tpe))
    np.testing.assert_allclose(np.asarray(out_p), np.asarray(ref), rtol=1e-5, atol=1e-5)

    # Larger batch exercising padding, balanced tiling and the >=2-step grid.
    N2 = 40000
    x2 = jax.random.uniform(jax.random.PRNGKey(1), (N2, 2), dtype=jnp.float32)
    out2 = jax.block_until_ready(gate_forward(x2, lut_tpe))
    ref2 = jax.block_until_ready(gate_reference(x2, lut_tpe))
    assert out2.shape == (N2, 1)
    np.testing.assert_allclose(np.asarray(out2), np.asarray(ref2), rtol=1e-5, atol=1e-5)

    print("KERNEL_OK")
</pallas_src>

<mosaic_0001>
module attributes {stable_mosaic.version = 11 : i64} {
  func.func @gate_kernel(%arg0: i32, %arg1: memref<4xf32, #tpu.memory_space<smem>>, %arg2: memref<2x8x1024xf32, #tpu.memory_space<vmem>>, %arg3: memref<8x1024xf32, #tpu.memory_space<vmem>>) attributes {dimension_semantics = [#tpu.dimension_semantics<parallel>], iteration_bounds = array<i64: 1>, scalar_prefetch = 0 : i64, scratch_operands = 0 : i64, tpu.core_type = #tpu.core_type<tc>, window_params = [{transform_indices = @transform_0, window_bounds = array<i64: 4>}, {transform_indices = @transform_1, window_bounds = array<i64: 2, 8, 1024>}, {transform_indices = @transform_2, window_bounds = array<i64: 8, 1024>}]} {
    %c0 = arith.constant 0 : index
    %c0_0 = arith.constant 0 : index
    %c0_1 = arith.constant 0 : index
    %0 = vector.load %arg2[%c0, %c0_0, %c0_1] : memref<2x8x1024xf32, #tpu.memory_space<vmem>>, vector<1x8x1024xf32>
    %1 = vector.shape_cast %0 : vector<1x8x1024xf32> to vector<8x1024xf32>
    %c1 = arith.constant 1 : index
    %c0_2 = arith.constant 0 : index
    %c0_3 = arith.constant 0 : index
    %2 = vector.load %arg2[%c1, %c0_2, %c0_3] : memref<2x8x1024xf32, #tpu.memory_space<vmem>>, vector<1x8x1024xf32>
    %3 = vector.shape_cast %2 : vector<1x8x1024xf32> to vector<8x1024xf32>
    %c0_4 = arith.constant 0 : index
    %4 = memref.load %arg1[%c0_4] : memref<4xf32, #tpu.memory_space<smem>>
    %c1_5 = arith.constant 1 : index
    %5 = memref.load %arg1[%c1_5] : memref<4xf32, #tpu.memory_space<smem>>
    %c2 = arith.constant 2 : index
    %6 = memref.load %arg1[%c2] : memref<4xf32, #tpu.memory_space<smem>>
    %c3 = arith.constant 3 : index
    %7 = memref.load %arg1[%c3] : memref<4xf32, #tpu.memory_space<smem>>
    %8 = vector.broadcast %5 : f32 to vector<8x1024xf32>
    %9 = arith.mulf %8, %1 : vector<8x1024xf32>
    %10 = vector.broadcast %4 : f32 to vector<8x1024xf32>
    %11 = arith.addf %9, %10 : vector<8x1024xf32>
    %12 = vector.broadcast %7 : f32 to vector<8x1024xf32>
    %13 = arith.mulf %12, %1 : vector<8x1024xf32>
    %14 = vector.broadcast %6 : f32 to vector<8x1024xf32>
    %15 = arith.addf %13, %14 : vector<8x1024xf32>
    %16 = arith.mulf %15, %3 : vector<8x1024xf32>
    %17 = arith.addf %11, %16 : vector<8x1024xf32>
    %c0_6 = arith.constant 0 : index
    %c0_7 = arith.constant 0 : index
    %18 = vector.load %arg3[%c0_6, %c0_7] : memref<8x1024xf32, #tpu.memory_space<vmem>>, vector<8x1024xf32>
    tpu.vector_store %arg3[%c0_6, %c0_7], %17 {strides = array<i32>} : memref<8x1024xf32, #tpu.memory_space<vmem>>, vector<8x1024xf32>,
    return
  }
  func.func @transform_0(%arg0: i32) -> i32 {
    %c0_i32 = arith.constant 0 : i32
    %c0_i32_0 = arith.constant 0 : i32
    return %c0_i32 : i32
  }
  func.func @transform_1(%arg0: i32) -> (i32, i32, i32) {
    %c0_i32 = arith.constant 0 : i32
    %c0_i32_0 = arith.constant 0 : i32
    %c0_i32_1 = arith.constant 0 : i32
    return %c0_i32, %arg0, %c0_i32_0 : i32, i32, i32
  }
  func.func @transform_2(%arg0: i32) -> (i32, i32) {
    %c0_i32 = arith.constant 0 : i32
    %c0_i32_0 = arith.constant 0 : i32
    return %arg0, %c0_i32 : i32, i32
  }
}

</mosaic_0001>

<bundles_post_ra>
// kernel: gate_forward.1
= control target key start
LH: loop header
LB: loop body
LE: loop exit
PB: predicated region body
PF: predicated region fallthrough
CT: control target
= control target key end

     0   :  { %7 = vsyncpa [#allocation3], 0  ;;  %s247_s0 = inlined_call_operand.vmem [shape: f32[4], index: 0, kind: input, shape index: {}]   ;;  %s248_s1 = inlined_call_operand.vmem [shape: f32[2,8,1024], index: 1, kind: input, shape index: {}]   ;;  %s249_s2 = inlined_call_operand.vmem [shape: f32[8,1024], index: 2, kind: output, shape index: {}]  }
   0x1   :  { %s14_s11 = sshll.u32 %s247_s0, 4  ;;  %s15_s11 = int_to_ptr.vmem [resolvable:$true] %s14_s11 }
   0x2   :  { %s122_s12 = scalar_lea.vmem %s15_s11, 16  ;;  %p127_p1 = scmp.lt.s32.totalorder %s15_s11, %s15_s11 }
   0x3   :  { %p123_p0 = scmp.ne.s32.totalorder %s15_s11, %s122_s12  ;;  %p128_p2 = scmp.lt.s32.totalorder %s122_s12, %s122_s12 }
   0x5   :  { %p129_p3 = por %p128_p2, %p127_p1 }
   0x7   :  { %p130_p4 = pnand %p129_p3, %p123_p0 }
   0x9   :  { %133 = shalt.err (!%p130_p4)
}
   0xa   :  { %s136_s13 = smov [#allocation2]  }
   0xb   :  { %17 = dma.vmem_to_smem %s15_s11, 16, %s136_s13, [#allocation3]  }
   0xc   :  { %134 = dma.done.wait [#allocation3], 16  }
   0xd   :  { %135 = vsyncadd [#allocation3], 4294967280 }
   0xe   :  { %23 = sfence }
   0xf   :  { %s41_s14 = sld [smem:[#allocation2]]  ;;  %v24_v0 = vld [vmem:[%s248_s1] sm:$0xff]  ;;  %v25_v3 = vld [vmem:[%s248_s1 + $0x8] sm:$0xff]  ;;  %v26_v4 = vld [vmem:[%s248_s1 + $0x10] sm:$0xff] }
  0x10   :  { %s118_s15 = sld [smem:[#allocation2 + $0x1]]  ;;  %v27_v9 = vld [vmem:[%s248_s1 + $0x18] sm:$0xff]  ;;  %v28_v10 = vld [vmem:[%s248_s1 + $0x20] sm:$0xff]  ;;  %v29_v11 = vld [vmem:[%s248_s1 + $0x28] sm:$0xff] }
  0x11   :  { %s119_s16 = sld [smem:[#allocation2 + $0x2]]  ;;  %v110_v20 = vld [vmem:[%s248_s1 + $0x40] sm:$0xff]  ;;  %v111_v21 = vld [vmem:[%s248_s1 + $0x48] sm:$0xff]  ;;  %v112_v28 = vld [vmem:[%s248_s1 + $0x50] sm:$0xff] }
  0x12   :  { %s120_s17 = sld [smem:[#allocation2 + $0x3]]  ;;  %v113_v29 = vld [vmem:[%s248_s1 + $0x58] sm:$0xff]  ;;  %v30_v32 = vld [vmem:[%s248_s1 + $0x30] sm:$0xff]  ;;  %v114_v35 = vld [vmem:[%s248_s1 + $0x60] sm:$0xff] }
  0x13   :  { %v115_v41 = vld [vmem:[%s248_s1 + $0x68] sm:$0xff]  ;;  %v31_v47 = vld [vmem:[%s248_s1 + $0x38] sm:$0xff]  ;;  %v116_v51 = vld [vmem:[%s248_s1 + $0x70] sm:$0xff] }
  0x14   :  { %v117_v62 = vld [vmem:[%s248_s1 + $0x78] sm:$0xff] }
  0x15   :  { %v158_v2 = vstv %s41_s14 }
  0x16   :  { %v45_v1 = vstv %s118_s15 }
  0x17   :  { %v46_v5 = vmul.f32 %v45_v1, %v24_v0  ;;  %v166_v6 = vstv %s119_s16  ;;  %v47_v7 = vmul.f32 %v45_v1, %v25_v3  ;;  %v48_v8 = vmul.f32 %v45_v1, %v26_v4 }
  0x18   :  { %v63_v12 = vstv %s120_s17  ;;  %v49_v13 = vmul.f32 %v45_v1, %v27_v9  ;;  %v50_v14 = vmul.f32 %v45_v1, %v28_v10  ;;  %v51_v15 = vmul.f32 %v45_v1, %v29_v11 }
  0x19   :  { %v55_v16 = vadd.f32 %v158_v2, %v46_v5  ;;  %v64_v17 = vmul.f32 %v63_v12, %v24_v0  ;;  %v56_v18 = vadd.f32 %v158_v2, %v47_v7  ;;  %v65_v19 = vmul.f32 %v63_v12, %v25_v3 }
  0x1a   :  { %v57_v22 = vadd.f32 %v158_v2, %v48_v8  ;;  %v66_v23 = vmul.f32 %v63_v12, %v26_v4  ;;  %v58_v24 = vadd.f32 %v158_v2, %v49_v13  ;;  %v67_v25 = vmul.f32 %v63_v12, %v27_v9 }
  0x1b   :  { %v73_v26 = vadd.f32 %v166_v6, %v64_v17  ;;  %v74_v27 = vadd.f32 %v166_v6, %v65_v19  ;;  %v59_v30 = vadd.f32 %v158_v2, %v50_v14  ;;  %v68_v31 = vmul.f32 %v63_v12, %v28_v10 }
  0x1c   :  { %v75_v33 = vadd.f32 %v166_v6, %v66_v23  ;;  %v76_v34 = vadd.f32 %v166_v6, %v67_v25  ;;  %v60_v36 = vadd.f32 %v158_v2, %v51_v15  ;;  %v69_v37 = vmul.f32 %v63_v12, %v29_v11 }
  0x1d   :  { %v81_v38 = vmul.f32 %v110_v20, %v73_v26  ;;  %v82_v39 = vmul.f32 %v111_v21, %v74_v27  ;;  %v77_v40 = vadd.f32 %v166_v6, %v68_v31  ;;  %v52_v42 = vmul.f32 %v45_v1, %v30_v32 }
  0x1e   :  { %v83_v43 = vmul.f32 %v112_v28, %v75_v33  ;;  %v84_v44 = vmul.f32 %v113_v29, %v76_v34  ;;  %v78_v45 = vadd.f32 %v166_v6, %v69_v37  ;;  %v70_v46 = vmul.f32 %v63_v12, %v30_v32 }
  0x1f   :  { %v89_v48 = vadd.f32 %v81_v38, %v55_v16  ;;  %v90_v49 = vadd.f32 %v82_v39, %v56_v18  ;;  %v85_v50 = vmul.f32 %v114_v35, %v77_v40  ;;  %v61_v52 = vadd.f32 %v158_v2, %v52_v42 }
  0x20   :  { %v91_v53 = vadd.f32 %v83_v43, %v57_v22  ;;  %v92_v54 = vadd.f32 %v84_v44, %v58_v24  ;;  %v86_v55 = vmul.f32 %v115_v41, %v78_v45  ;;  %v79_v56 = vadd.f32 %v166_v6, %v70_v46 }
  0x21   :  { %97 = vst [vmem:[%s249_s2] sm:$0xff] %v89_v48  ;;  %98 = vst [vmem:[%s249_s2 + $0x8] sm:$0xff] %v90_v49  ;;  %v93_v57 = vadd.f32 %v85_v50, %v59_v30  ;;  %v53_v58 = vmul.f32 %v45_v1, %v31_v47  ;;  %v71_v59 = vmul.f32 %v63_v12, %v31_v47 }
  0x22   :  { %99 = vst [vmem:[%s249_s2 + $0x10] sm:$0xff] %v91_v53  ;;  %100 = vst [vmem:[%s249_s2 + $0x18] sm:$0xff] %v92_v54  ;;  %v94_v60 = vadd.f32 %v86_v55, %v60_v36  ;;  %v87_v61 = vmul.f32 %v116_v51, %v79_v56 }
  0x23   :  { %101 = vst [vmem:[%s249_s2 + $0x20] sm:$0xff] %v93_v57  ;;  %v62_v63 = vadd.f32 %v158_v2, %v53_v58  ;;  %v80_v0 = vadd.f32 %v166_v6, %v71_v59 }
  0x24   :  { %102 = vst [vmem:[%s249_s2 + $0x28] sm:$0xff] %v94_v60  ;;  %v95_v1 = vadd.f32 %v87_v61, %v61_v52 }
  0x25   :  { %v88_v3 = vmul.f32 %v117_v62, %v80_v0 }
  0x26   :  { %103 = vst [vmem:[%s249_s2 + $0x30] sm:$0xff] %v95_v1 }
  0x27   :  { %v96_v4 = vadd.f32 %v88_v3, %v62_v63 }
  0x29   :  { %104 = vst [vmem:[%s249_s2 + $0x38] sm:$0xff] %v96_v4 }
  0x2a   :  { %109 = vsyncpa [#allocation3], 1 }

</bundles_post_ra>
